<compile_context>
chip_gen: v7x
topology: tpu7x:2x2x1
jax: 0.10.0
libtpu: 0.0.40
codegen_flags: <defaults>
</compile_context>

<pallas_src>
import jax
import jax.numpy as jnp
from jax.experimental import pallas as pl
from jax.experimental.pallas import tpu as pltpu

_NPAD = 128  # lane-dense padded output width (true logits live in columns 0:2)


def _round_up(x, m):
    return ((x + m - 1) // m) * m


def _abcnn_head_kernel(tok_ref, emb_ref, w_ref, b_ref, o_ref):
    """One batch tile per grid step; both sentences handled within the step.

    tok_ref : VMEM int32 (TB, 2, L, 1)  token ids (trailing 1 keeps ids on sublanes)
    emb_ref : VMEM f32   (Vp, Ep)       zero-padded embedding table (resident)
    w_ref   : VMEM f32   (2, Ep, 128)   per-sentence fc weight halves, 1/L folded,
                                        zero-padded lane-dense (true cols 0:2)
    b_ref   : VMEM f32   (1, 128)       fc bias, zero-padded lane-dense
    o_ref   : VMEM f32   (TB, 128)      lane-dense logits slab (true cols 0:2)
    """
    tb, _, l, _ = tok_ref.shape
    vp, _ = emb_ref.shape

    emb = emb_ref[...]                                          # (Vp, Ep)

    acc = None
    for p in range(2):                                          # two sentences
        tok = tok_ref[:, p]                                     # (TB, L, 1) int32
        lane_ids = jax.lax.broadcasted_iota(jnp.int32, (tb, l, vp), 2)
        onehot = (tok == lane_ids).astype(jnp.float32)          # (TB, L, Vp)
        counts = jnp.sum(onehot, axis=1)                        # (TB, Vp) token histogram
        # sum_t emb[tok[b, p, t]]  ==  counts @ emb   (MXU)
        summed = jnp.dot(counts, emb,
                         preferred_element_type=jnp.float32)    # (TB, Ep)
        # mean + fc-half: 1/L already folded into w_ref[p]
        proj = jnp.dot(summed, w_ref[p],
                       preferred_element_type=jnp.float32)      # (TB, 128)
        acc = proj if acc is None else acc + proj

    o_ref[...] = acc + b_ref[...]                               # broadcast bias add


def abcnn_forward(tokens, emb_table, fc_w_t, fc_b):
    """Full Model.forward (layers = []).

    tokens    : int32 (B, 2, L)
    emb_table : f32   (V, E)
    fc_w_t    : f32   (2E, 2)   (torch fc.weight transposed)
    fc_b      : f32   (2,)
    returns   : f32   (B, 2)
    """
    B, _, L = tokens.shape
    V, E = emb_table.shape

    Vp = _round_up(V, 128)
    Ep = _round_up(E, 128)
    N = _NPAD

    # --- Host-side one-time prep (tiny) --------------------------------------
    # Fold the AllAP 1/L mean into the FC weight, split into per-sentence halves
    # and pad everything lane-dense.
    w_scaled = fc_w_t.astype(jnp.float32) * (1.0 / L)             # (2E, 2)
    w_pad = jnp.zeros((2, Ep, N), jnp.float32)
    w_pad = w_pad.at[0, :E, :2].set(w_scaled[:E])
    w_pad = w_pad.at[1, :E, :2].set(w_scaled[E:])
    b_pad = jnp.zeros((1, N), jnp.float32).at[0, :2].set(fc_b.astype(jnp.float32))
    emb_pad = jnp.zeros((Vp, Ep), jnp.float32).at[:V, :E].set(
        emb_table.astype(jnp.float32))

    # Token ids on sublanes (trailing unit lane dim) so the in-kernel one-hot is
    # a pure lane-broadcast compare.
    tok4 = tokens.astype(jnp.int32).reshape(B, 2, L, 1)

    # Batch tiling: whole batch in one step when small, 128-row tiles otherwise.
    TB = B if B <= 128 else 128
    Bp = _round_up(B, TB)
    if Bp != B:
        tok4 = jnp.concatenate(
            [tok4, jnp.zeros((Bp - B, 2, L, 1), jnp.int32)], axis=0)

    grid = (Bp // TB,)

    out = pl.pallas_call(
        _abcnn_head_kernel,
        out_shape=jax.ShapeDtypeStruct((Bp, N), jnp.float32),
        grid=grid,
        in_specs=[
            pl.BlockSpec((TB, 2, L, 1), lambda i: (i, 0, 0, 0)),   # token ids
            pl.BlockSpec((Vp, Ep), lambda i: (0, 0)),              # emb table (resident)
            pl.BlockSpec((2, Ep, N), lambda i: (0, 0, 0)),         # fc weight halves
            pl.BlockSpec((1, N), lambda i: (0, 0)),                # fc bias
        ],
        out_specs=pl.BlockSpec((TB, N), lambda i: (i, 0)),
        compiler_params=pltpu.CompilerParams(
            dimension_semantics=("parallel",),
        ),
    )(tok4, emb_pad, w_pad, b_pad)

    return out[:B, :2]                                             # (B, 2)


def _reference(tokens, emb_table, fc_w_t, fc_b):
    x1 = jnp.take(emb_table, tokens[:, 0, :], axis=0)
    x2 = jnp.take(emb_table, tokens[:, 1, :], axis=0)
    a1 = jnp.mean(x1, axis=1)
    a2 = jnp.mean(x2, axis=1)
    feats = jnp.concatenate([a1, a2], axis=-1)
    return feats @ fc_w_t + fc_b


if __name__ == "__main__":
    B, L, E, V = 2, 8, 32, 50          # batch, max_length, embedding dim, vocab
    final_size = 2 * E                 # AllAP(x1) ++ AllAP(x2)

    key = jax.random.PRNGKey(0)
    k_tok, k_emb, k_w, k_b = jax.random.split(key, 4)

    tokens = jax.random.randint(k_tok, (B, 2, L), 0, V, dtype=jnp.int32)
    emb_table = jax.random.normal(k_emb, (V, E), dtype=jnp.float32)
    # torch nn.Linear(final_size, 2): weight (2, final_size), bias (2,)
    fc_w = jax.random.normal(k_w, (2, final_size), dtype=jnp.float32) * 0.1
    fc_b = jax.random.normal(k_b, (2,), dtype=jnp.float32) * 0.1
    fc_w_t = fc_w.T                    # (final_size, 2)

    logits = jax.jit(abcnn_forward)(tokens, emb_table, fc_w_t, fc_b)
    logits = jax.block_until_ready(logits)

    ref = _reference(tokens, emb_table, fc_w_t, fc_b)
    assert logits.shape == (B, 2)
    assert jnp.allclose(logits, ref, atol=1e-5, rtol=1e-5)

    print("KERNEL_OK")
</pallas_src>

<mosaic_0001>
module attributes {stable_mosaic.version = 11 : i64} {
  func.func @_abcnn_head_kernel(%arg0: i32, %arg1: memref<2x2x8x1xi32, #tpu.memory_space<vmem>>, %arg2: memref<128x128xf32, #tpu.memory_space<vmem>>, %arg3: memref<2x128x128xf32, #tpu.memory_space<vmem>>, %arg4: memref<1x128xf32, #tpu.memory_space<vmem>>, %arg5: memref<2x128xf32, #tpu.memory_space<vmem>>) attributes {dimension_semantics = [#tpu.dimension_semantics<parallel>], iteration_bounds = array<i64: 1>, scalar_prefetch = 0 : i64, scratch_operands = 0 : i64, tpu.core_type = #tpu.core_type<tc>, window_params = [{transform_indices = @transform_0, window_bounds = array<i64: 2, 2, 8, 1>}, {pipeline_mode = #tpu.pipeline_mode<synchronous>, transform_indices = @transform_1, window_bounds = array<i64: 128, 128>}, {pipeline_mode = #tpu.pipeline_mode<synchronous>, transform_indices = @transform_2, window_bounds = array<i64: 2, 128, 128>}, {pipeline_mode = #tpu.pipeline_mode<synchronous>, transform_indices = @transform_3, window_bounds = array<i64: 1, 128>}, {transform_indices = @transform_4, window_bounds = array<i64: 2, 128>}]} {
    %c0 = arith.constant 0 : index
    %c0_0 = arith.constant 0 : index
    %0 = vector.load %arg2[%c0, %c0_0] : memref<128x128xf32, #tpu.memory_space<vmem>>, vector<128x128xf32>
    %c0_1 = arith.constant 0 : index
    %c0_2 = arith.constant 0 : index
    %c0_3 = arith.constant 0 : index
    %c0_4 = arith.constant 0 : index
    %1 = vector.load %arg1[%c0_1, %c0_2, %c0_3, %c0_4] : memref<2x2x8x1xi32, #tpu.memory_space<vmem>>, vector<2x1x8x1xi32>
    %2 = vector.shape_cast %1 : vector<2x1x8x1xi32> to vector<2x8x1xi32>
    %3 = tpu.iota {dimensions = array<i32: 2>} : vector<2x8x128xi32>
    %4 = vector.broadcast %2 : vector<2x8x1xi32> to vector<2x8x128xi32>
    %5 = arith.cmpi eq, %4, %3 : vector<2x8x128xi32>
    %6 = arith.extui %5 : vector<2x8x128xi1> to vector<2x8x128xi32>
    %7 = arith.sitofp %6 : vector<2x8x128xi32> to vector<2x8x128xf32>
    %cst = arith.constant dense<0.000000e+00> : vector<2x128xf32>
    %8 = vector.multi_reduction <add>, %7, %cst [1] : vector<2x8x128xf32> to vector<2x128xf32>
    %cst_5 = arith.constant dense<0.000000e+00> : vector<2x128xf32>
    %9 = tpu.matmul %8, %0, %cst_5 {dimension_numbers = #tpu.dot_dimension_numbers<[1], [0], [0], [1], [0, 0, 1, 1], [], []>} : vector<2x128xf32>, vector<128x128xf32>, vector<2x128xf32> -> vector<2x128xf32>
    %c0_6 = arith.constant 0 : index
    %c0_7 = arith.constant 0 : index
    %c0_8 = arith.constant 0 : index
    %10 = vector.load %arg3[%c0_6, %c0_7, %c0_8] : memref<2x128x128xf32, #tpu.memory_space<vmem>>, vector<1x128x128xf32>
    %11 = vector.shape_cast %10 : vector<1x128x128xf32> to vector<128x128xf32>
    %cst_9 = arith.constant dense<0.000000e+00> : vector<2x128xf32>
    %12 = tpu.matmul %9, %11, %cst_9 {dimension_numbers = #tpu.dot_dimension_numbers<[1], [0], [0], [1], [0, 0, 1, 1], [], []>} : vector<2x128xf32>, vector<128x128xf32>, vector<2x128xf32> -> vector<2x128xf32>
    %c0_10 = arith.constant 0 : index
    %c1 = arith.constant 1 : index
    %c0_11 = arith.constant 0 : index
    %c0_12 = arith.constant 0 : index
    %13 = vector.load %arg1[%c0_10, %c1, %c0_11, %c0_12] : memref<2x2x8x1xi32, #tpu.memory_space<vmem>>, vector<2x1x8x1xi32>
    %14 = vector.shape_cast %13 : vector<2x1x8x1xi32> to vector<2x8x1xi32>
    %15 = tpu.iota {dimensions = array<i32: 2>} : vector<2x8x128xi32>
    %16 = vector.broadcast %14 : vector<2x8x1xi32> to vector<2x8x128xi32>
    %17 = arith.cmpi eq, %16, %15 : vector<2x8x128xi32>
    %18 = arith.extui %17 : vector<2x8x128xi1> to vector<2x8x128xi32>
    %19 = arith.sitofp %18 : vector<2x8x128xi32> to vector<2x8x128xf32>
    %cst_13 = arith.constant dense<0.000000e+00> : vector<2x128xf32>
    %20 = vector.multi_reduction <add>, %19, %cst_13 [1] : vector<2x8x128xf32> to vector<2x128xf32>
    %cst_14 = arith.constant dense<0.000000e+00> : vector<2x128xf32>
    %21 = tpu.matmul %20, %0, %cst_14 {dimension_numbers = #tpu.dot_dimension_numbers<[1], [0], [0], [1], [0, 0, 1, 1], [], []>} : vector<2x128xf32>, vector<128x128xf32>, vector<2x128xf32> -> vector<2x128xf32>
    %c1_15 = arith.constant 1 : index
    %c0_16 = arith.constant 0 : index
    %c0_17 = arith.constant 0 : index
    %22 = vector.load %arg3[%c1_15, %c0_16, %c0_17] : memref<2x128x128xf32, #tpu.memory_space<vmem>>, vector<1x128x128xf32>
    %23 = vector.shape_cast %22 : vector<1x128x128xf32> to vector<128x128xf32>
    %cst_18 = arith.constant dense<0.000000e+00> : vector<2x128xf32>
    %24 = tpu.matmul %21, %23, %cst_18 {dimension_numbers = #tpu.dot_dimension_numbers<[1], [0], [0], [1], [0, 0, 1, 1], [], []>} : vector<2x128xf32>, vector<128x128xf32>, vector<2x128xf32> -> vector<2x128xf32>
    %25 = arith.addf %12, %24 : vector<2x128xf32>
    %c0_19 = arith.constant 0 : index
    %c0_20 = arith.constant 0 : index
    %26 = vector.load %arg4[%c0_19, %c0_20] : memref<1x128xf32, #tpu.memory_space<vmem>>, vector<1x128xf32>
    %27 = vector.broadcast %26 : vector<1x128xf32> to vector<2x128xf32>
    %28 = arith.addf %25, %27 : vector<2x128xf32>
    %c0_21 = arith.constant 0 : index
    %c0_22 = arith.constant 0 : index
    %29 = vector.load %arg5[%c0_21, %c0_22] : memref<2x128xf32, #tpu.memory_space<vmem>>, vector<2x128xf32>
    tpu.vector_store %arg5[%c0_21, %c0_22], %28 {strides = array<i32>} : memref<2x128xf32, #tpu.memory_space<vmem>>, vector<2x128xf32>,
    return
  }
  func.func @transform_0(%arg0: i32) -> (i32, i32, i32, i32) {
    %c0_i32 = arith.constant 0 : i32
    %c0_i32_0 = arith.constant 0 : i32
    %c0_i32_1 = arith.constant 0 : i32
    %c0_i32_2 = arith.constant 0 : i32
    return %arg0, %c0_i32, %c0_i32_0, %c0_i32_1 : i32, i32, i32, i32
  }
  func.func @transform_1(%arg0: i32) -> (i32, i32) {
    %c0_i32 = arith.constant 0 : i32
    %c0_i32_0 = arith.constant 0 : i32
    %c0_i32_1 = arith.constant 0 : i32
    return %c0_i32, %c0_i32_0 : i32, i32
  }
  func.func @transform_2(%arg0: i32) -> (i32, i32, i32) {
    %c0_i32 = arith.constant 0 : i32
    %c0_i32_0 = arith.constant 0 : i32
    %c0_i32_1 = arith.constant 0 : i32
    %c0_i32_2 = arith.constant 0 : i32
    return %c0_i32, %c0_i32_0, %c0_i32_1 : i32, i32, i32
  }
  func.func @transform_3(%arg0: i32) -> (i32, i32) {
    %c0_i32 = arith.constant 0 : i32
    %c0_i32_0 = arith.constant 0 : i32
    %c0_i32_1 = arith.constant 0 : i32
    return %c0_i32, %c0_i32_0 : i32, i32
  }
  func.func @transform_4(%arg0: i32) -> (i32, i32) {
    %c0_i32 = arith.constant 0 : i32
    %c0_i32_0 = arith.constant 0 : i32
    return %arg0, %c0_i32 : i32, i32
  }
}

</mosaic_0001>

<bundles_post_ra>
// kernel: abcnn_forward.1
= control target key start
LH: loop header
LB: loop body
LE: loop exit
PB: predicated region body
PF: predicated region fallthrough
CT: control target
= control target key end

     0   :  { %v792_v2 = vmov 0   ;;  %v793_v10 = vmov 0.0|0.0   ;;  %s1037_s0 = inlined_call_operand.vmem [shape: s32[2,2,8,1], index: 0, kind: input, shape index: {}]   ;;  %s1038_s1 = inlined_call_operand.vmem [shape: f32[128,128], index: 1, kind: input, shape index: {}]   ;;  %s1039_s2 = inlined_call_operand.vmem [shape: f32[2,128,128], index: 2, kind: input, shape index: {}]   ;;  %s1040_s3 = inlined_call_operand.vmem [shape: f32[1,128], index: 3, kind: input, shape index: {}]   ;;  %s1041_s4 = inlined_call_operand.hbm [shape: f32[2,128], index: 4, kind: output, shape index: {}]  }
   0x1   :  { %v436_v0 = vld [vmem:[%s1037_s0 + $0x8] sm:$0xff]  ;;  %v34_v1 = vld [vmem:[%s1037_s0] sm:$0xff]  ;;  %767 = vset.pattern.permute.xlu1 %v792_v2  ;;  %766 = vset.pattern.permute.xlu0 %v792_v2  ;;  %v20_v6 = vld [vmem:[%s1038_s1 + $0x10] sm:$0xff] }
   0x2   :  { %v18_v3 = vld [vmem:[%s1038_s1] sm:$0xff]  ;;  %v19_v4 = vld [vmem:[%s1038_s1 + $0x8] sm:$0xff]  ;;  %157 = vperm.xlu1 %767, %v436_v0   ;;  %39 = vperm.xlu0 %766, %v34_v1   ;;  %v21_v7 = vld [vmem:[%s1038_s1 + $0x18] sm:$0xff] }
   0x3   :  { %v666_v5 = vpack.c.bf16 %v19_v4, %v18_v3  ;;  %v437_v8 = vld [vmem:[%s1037_s0 + $0x18] sm:$0xff]  ;;  %v35_v9 = vld [vmem:[%s1037_s0 + $0x10] sm:$0xff]  ;;  %665 = vmatprep.subr.bf16.mxu0 %v793_v10  ;;  %689 = vmatprep.subr.bf16.mxu1 %v793_v10  ;;  %v669_v11 = vpack.c.bf16 %v21_v7, %v20_v6 }
   0x5   :  { %667 = vmatpush3.bf16.msra.mxu0 %v666_v5  ;;  %691 = vmatpush3.bf16.msra.mxu1 %v666_v5 }
   0x6   :  { %9 = vsyncpa [#allocation3], 0  ;;  %668 = vmatprep.subr.bf16.mxu0 %v793_v10  ;;  %692 = vmatprep.subr.bf16.mxu1 %v793_v10  ;;  %v22_v12 = vld [vmem:[%s1038_s1 + $0x20] sm:$0xff]  ;;  %v23_v13 = vld [vmem:[%s1038_s1 + $0x28] sm:$0xff]  ;;  %vm794_vm0 = vmmov 0   ;;  %v795_v23 = vmov 0.0   ;;  %v36_v31 = vlaneseq }
   0x7   :  { %160 = vperm.xlu1 %767, %v437_v8   ;;  %42 = vperm.xlu0 %766, %v35_v9   ;;  %v672_v14 = vpack.c.bf16 %v23_v13, %v22_v12  ;;  %v24_v15 = vld [vmem:[%s1038_s1 + $0x30] sm:$0xff]  ;;  %v25_v16 = vld [vmem:[%s1038_s1 + $0x38] sm:$0xff]  ;;  %v26_v18 = vld [vmem:[%s1038_s1 + $0x40] sm:$0xff]  ;;  %vm64_vm5 = vcmask 1041409   ;;  %s796_s9 = smov [#allocation2]  }
   0x8   :  { %v675_v17 = vpack.c.bf16 %v25_v16, %v24_v15  ;;  %v27_v19 = vld [vmem:[%s1038_s1 + $0x48] sm:$0xff]  ;;  %v28_v21 = vld [vmem:[%s1038_s1 + $0x50] sm:$0xff]  ;;  %v29_v22 = vld [vmem:[%s1038_s1 + $0x58] sm:$0xff]  ;;  %557 = vmatprep.mubr.msk.f32.mxu0 %vm794_vm0, %v795_v23  ;;  %592 = vmatprep.mubr.msk.f32.mxu1 %vm794_vm0, %v795_v23  ;;  %v37_v32 = vand.u32 127, %v36_v31  ;;  %s426_s10 = sshll.u32 %s796_s9, 4  ;;  %s427_s10 = int_to_ptr.vmem [resolvable:$true] %s426_s10 }
   0x9   :  { %670 = vmatpush3.bf16.msra.mxu0 %v669_v11  ;;  %694 = vmatpush3.bf16.msra.mxu1 %v669_v11  ;;  %v678_v20 = vpack.c.bf16 %v27_v19, %v26_v18  ;;  %v681_v24 = vpack.c.bf16 %v29_v22, %v28_v21  ;;  %v30_v25 = vld [vmem:[%s1038_s1 + $0x60] sm:$0xff]  ;;  %v31_v26 = vld [vmem:[%s1038_s1 + $0x68] sm:$0xff]  ;;  %v32_v28 = vld [vmem:[%s1038_s1 + $0x70] sm:$0xff]  ;;  %s768_s11 = scalar_lea.vmem %s427_s10, 32  ;;  %p773_p1 = scmp.lt.s32.totalorder %s427_s10, %s427_s10 }
   0xa   :  { %671 = vmatprep.subr.bf16.mxu0 %v793_v10  ;;  %695 = vmatprep.subr.bf16.mxu1 %v793_v10  ;;  %v684_v27 = vpack.c.bf16 %v31_v26, %v30_v25  ;;  %v33_v29 = vld [vmem:[%s1038_s1 + $0x78] sm:$0xff]  ;;  %v440_v55 = vld [vmem:[%s1039_s2 + $0x80] sm:$0xff]  ;;  %v441_v60 = vld [vmem:[%s1039_s2 + $0x88] sm:$0xff]  ;;  %p769_p0 = scmp.ne.s32.totalorder %s427_s10, %s768_s11  ;;  %p774_p2 = scmp.lt.s32.totalorder %s768_s11, %s768_s11 }
   0xb   :  { %v687_v30 = vpack.c.bf16 %v33_v29, %v32_v28  ;;  %v137_v61 = vld [vmem:[%s1039_s2] sm:$0xff]  ;;  %v138_v62 = vld [vmem:[%s1039_s2 + $0x8] sm:$0xff]  ;;  %v714_v1 = vpack.c.bf16 %v441_v60, %v440_v55  ;;  %v442_v7 = vld [vmem:[%s1039_s2 + $0x90] sm:$0xff] }
   0xc   :  { %v738_v2 = vpack.c.bf16 %v138_v62, %v137_v61  ;;  %v443_v8 = vld [vmem:[%s1039_s2 + $0x98] sm:$0xff]  ;;  %v139_v9 = vld [vmem:[%s1039_s2 + $0x10] sm:$0xff]  ;;  %v444_v16 = vld [vmem:[%s1039_s2 + $0xa0] sm:$0xff]  ;;  %p775_p3 = por %p774_p2, %p773_p1 }
   0xd   :  { %673 = vmatpush3.bf16.msra.mxu0 %v672_v14  ;;  %697 = vmatpush3.bf16.msra.mxu1 %v672_v14  ;;  %v140_v11 = vld [vmem:[%s1039_s2 + $0x18] sm:$0xff]  ;;  %v717_v14 = vpack.c.bf16 %v443_v8, %v442_v7  ;;  %v141_v18 = vld [vmem:[%s1039_s2 + $0x20] sm:$0xff]  ;;  %v142_v19 = vld [vmem:[%s1039_s2 + $0x28] sm:$0xff] }
   0xe   :  { %674 = vmatprep.subr.bf16.mxu0 %v793_v10  ;;  %698 = vmatprep.subr.bf16.mxu1 %v793_v10  ;;  %v741_v15 = vpack.c.bf16 %v140_v11, %v139_v9  ;;  %v744_v21 = vpack.c.bf16 %v142_v19, %v141_v18  ;;  %v446_v22 = vld [vmem:[%s1039_s2 + $0xb0] sm:$0xff]  ;;  %v144_v25 = vld [vmem:[%s1039_s2 + $0x38] sm:$0xff]  ;;  %v448_v28 = vld [vmem:[%s1039_s2 + $0xc0] sm:$0xff]  ;;  %p776_p4 = pnand %p775_p3, %p769_p0 }
   0xf   :  { %v449_v29 = vld [vmem:[%s1039_s2 + $0xc8] sm:$0xff] }
  0x10   :  { %v146_v31 = vld [vmem:[%s1039_s2 + $0x48] sm:$0xff] }
  0x11   :  { %676 = vmatpush3.bf16.msra.mxu0 %v675_v17  ;;  %700 = vmatpush3.bf16.msra.mxu1 %v675_v17  ;;  %v445_v17 = vld [vmem:[%s1039_s2 + $0xa8] sm:$0xff] }
  0x12   :  { %677 = vmatprep.subr.bf16.mxu0 %v793_v10  ;;  %701 = vmatprep.subr.bf16.mxu1 %v793_v10 }
  0x15   :  { %679 = vmatpush3.bf16.msra.mxu0 %v678_v20  ;;  %703 = vmatpush3.bf16.msra.mxu1 %v678_v20  ;;  %v720_v20 = vpack.c.bf16 %v445_v17, %v444_v16 }
  0x16   :  { %680 = vmatprep.subr.bf16.mxu0 %v793_v10  ;;  %704 = vmatprep.subr.bf16.mxu1 %v793_v10 }
  0x19   :  { %682 = vmatpush3.bf16.msra.mxu0 %v681_v24  ;;  %706 = vmatpush3.bf16.msra.mxu1 %v681_v24  ;;  %v447_v24 = vld [vmem:[%s1039_s2 + $0xb8] sm:$0xff] }
  0x1a   :  { %683 = vmatprep.subr.bf16.mxu0 %v793_v10  ;;  %707 = vmatprep.subr.bf16.mxu1 %v793_v10  ;;  %v723_v26 = vpack.c.bf16 %v447_v24, %v446_v22 }
  0x1d   :  { %685 = vmatpush3.bf16.msra.mxu0 %v684_v27  ;;  %709 = vmatpush3.bf16.msra.mxu1 %v684_v27 }
  0x1e   :  { %686 = vmatprep.subr.bf16.mxu0 %v793_v10  ;;  %710 = vmatprep.subr.bf16.mxu1 %v793_v10 }
  0x21   :  { %688 = vmatpush3.bf16.msra.mxu0 %v687_v30  ;;  %712 = vmatpush3.bf16.msra.mxu1 %v687_v30  ;;  %v145_v30 = vld [vmem:[%s1039_s2 + $0x40] sm:$0xff] }
  0x22   :  { %713 = vmatprep.subr.bf16.mxu0 %v793_v10  ;;  %737 = vmatprep.subr.bf16.mxu1 %v793_v10 }
  0x81   :  { %v158_v33 = vpop.permute.xlu1 %157  ;;  %v40_v34 = vpop.permute.xlu0 %39 }
  0x82   :  { %vm162_vm1 = vcmp.eq.s32.totalorder %v158_v33, %v37_v32  ;;  %vm44_vm2 = vcmp.eq.s32.totalorder %v40_v34, %v37_v32  ;;  %v750_v33 = vpack.c.bf16 %v146_v31, %v145_v30  ;;  %v450_v34 = vld [vmem:[%s1039_s2 + $0xd0] sm:$0xff] }
  0x83   :  { %v438_v35 = vsel %vm162_vm1, 1.0, %v795_v23  ;;  %v434_v36 = vsel %vm44_vm2, 1.0, %v795_v23 }
  0x84   :  { %v168_v37 = vrot.slane %v438_v35, 4  ;;  %v50_v38 = vrot.slane %v434_v36, 4 }
  0x86   :  { %v161_v39 = vpop.permute.xlu1 %160  ;;  %v43_v40 = vpop.permute.xlu0 %42  ;;  %v169_v41 = vadd.f32 %v438_v35, %v168_v37  ;;  %v51_v42 = vadd.f32 %v434_v36, %v50_v38  ;;  %v451_v35 = vld [vmem:[%s1039_s2 + $0xd8] sm:$0xff]  ;;  %v147_v36 = vld [vmem:[%s1039_s2 + $0x50] sm:$0xff] }
  0x87   :  { %vm163_vm3 = vcmp.eq.s32.totalorder %v161_v39, %v37_v32  ;;  %vm45_vm4 = vcmp.eq.s32.totalorder %v43_v40, %v37_v32  ;;  %v726_v32 = vpack.c.bf16 %v449_v29, %v448_v28  ;;  %v148_v37 = vld [vmem:[%s1039_s2 + $0x58] sm:$0xff]  ;;  %v729_v38 = vpack.c.bf16 %v451_v35, %v450_v34  ;;  %v452_v40 = vld [vmem:[%s1039_s2 + $0xe0] sm:$0xff] }
  0x88   :  { %v439_v43 = vsel %vm163_vm3, 1.0, %v795_v23  ;;  %v435_v44 = vsel %vm45_vm4, 1.0, %v795_v23  ;;  %v170_v45 = vrot.slane %v169_v41, 2  ;;  %v52_v46 = vrot.slane %v51_v42, 2 }
  0x89   :  { %v174_v47 = vrot.slane %v439_v43, 4  ;;  %v56_v48 = vrot.slane %v435_v44, 4  ;;  %v753_v39 = vpack.c.bf16 %v148_v37, %v147_v36 }
  0x8a   :  { %v171_v49 = vadd.f32 %v170_v45, %v169_v41  ;;  %v53_v50 = vadd.f32 %v52_v46, %v51_v42  ;;  %v453_v41 = vld [vmem:[%s1039_s2 + $0xe8] sm:$0xff]  ;;  %v149_v42 = vld [vmem:[%s1039_s2 + $0x60] sm:$0xff]  ;;  %v454_v46 = vld [vmem:[%s1039_s2 + $0xf0] sm:$0xff] }
  0x8b   :  { %v175_v51 = vadd.f32 %v439_v43, %v174_v47  ;;  %v57_v52 = vadd.f32 %v435_v44, %v56_v48  ;;  %v150_v43 = vld [vmem:[%s1039_s2 + $0x68] sm:$0xff]  ;;  %v732_v44 = vpack.c.bf16 %v453_v41, %v452_v40  ;;  %v455_v47 = vld [vmem:[%s1039_s2 + $0xf8] sm:$0xff]  ;;  %v151_v48 = vld [vmem:[%s1039_s2 + $0x70] sm:$0xff] }
  0x8c   :  { %v172_v56 = vrot.slane %v171_v49, 1  ;;  %v54_v57 = vrot.slane %v53_v50, 1  ;;  %v756_v45 = vpack.c.bf16 %v150_v43, %v149_v42 }
  0x8d   :  { %v176_v53 = vrot.slane %v175_v51, 2  ;;  %v58_v54 = vrot.slane %v57_v52, 2 }
  0x8e   :  { %v55_v3 = vadd.f32 %v54_v57, %v53_v50  ;;  %v173_v5 = vadd.f32 %v172_v56, %v171_v49  ;;  %v152_v49 = vld [vmem:[%s1039_s2 + $0x78] sm:$0xff]  ;;  %v735_v50 = vpack.c.bf16 %v455_v47, %v454_v46 }
  0x8f   :  { %v177_v58 = vadd.f32 %v176_v53, %v175_v51  ;;  %v59_v59 = vadd.f32 %v58_v54, %v57_v52  ;;  %v759_v51 = vpack.c.bf16 %v152_v49, %v151_v48 }
  0x91   :  { %v178_v63 = vrot.slane %v177_v58, 1  ;;  %v60_v0 = vrot.slane %v59_v59, 1 }
  0x93   :  { %v61_v4 = vadd.f32 %v60_v0, %v59_v59  ;;  %v179_v6 = vadd.f32 %v178_v63, %v177_v58  ;;  %v456_v58 = vld [vmem:[%s1040_s3] ss:$0 sm:$0xff] }
  0x95   :  { %v65_v12 = vsel %vm64_vm5, %v61_v4, %v55_v3  ;;  %v182_v13 = vsel %vm64_vm5, %v179_v6, %v173_v5 }
  0x96   :  { %558 = vmatmul.mubr.f32.vlgmr.msra.gmra.mrb[0].mxu0 %v65_v12  ;;  %593 = vmatmul.mubr.f32.vlgmr.msra.gmra.mrb[0].mxu1 %v182_v13 }
  0x97   :  { %715 = vmatpush3.bf16.msra.mxu0 %v714_v1  ;;  %739 = vmatpush3.bf16.msra.mxu1 %v738_v2 }
  0x98   :  { %716 = vmatprep.subr.bf16.mxu0 %v793_v10  ;;  %740 = vmatprep.subr.bf16.mxu1 %v793_v10 }
  0x99   :  { %627 = vmatprep.mubr.msk.f32.mxu0 %vm794_vm0, %v795_v23  ;;  %662 = vmatprep.mubr.msk.f32.mxu1 %vm794_vm0, %v795_v23  ;;  %v143_v23 = vld [vmem:[%s1039_s2 + $0x30] sm:$0xff] }
  0x9a   :  { %v747_v27 = vpack.c.bf16 %v144_v25, %v143_v23 }
  0x9b   :  { %718 = vmatpush3.bf16.msra.mxu0 %v717_v14  ;;  %742 = vmatpush3.bf16.msra.mxu1 %v741_v15 }
  0x9c   :  { %719 = vmatprep.subr.bf16.mxu0 %v793_v10  ;;  %743 = vmatprep.subr.bf16.mxu1 %v793_v10 }
  0x9f   :  { %721 = vmatpush3.bf16.msra.mxu0 %v720_v20  ;;  %745 = vmatpush3.bf16.msra.mxu1 %v744_v21 }
  0xa0   :  { %722 = vmatprep.subr.bf16.mxu0 %v793_v10  ;;  %746 = vmatprep.subr.bf16.mxu1 %v793_v10 }
  0xa3   :  { %724 = vmatpush3.bf16.msra.mxu0 %v723_v26  ;;  %748 = vmatpush3.bf16.msra.mxu1 %v747_v27 }
  0xa4   :  { %725 = vmatprep.subr.bf16.mxu0 %v793_v10  ;;  %749 = vmatprep.subr.bf16.mxu1 %v793_v10 }
  0xa7   :  { %727 = vmatpush3.bf16.msra.mxu0 %v726_v32  ;;  %751 = vmatpush3.bf16.msra.mxu1 %v750_v33 }
  0xa8   :  { %728 = vmatprep.subr.bf16.mxu0 %v793_v10  ;;  %752 = vmatprep.subr.bf16.mxu1 %v793_v10 }
  0xab   :  { %730 = vmatpush3.bf16.msra.mxu0 %v729_v38  ;;  %754 = vmatpush3.bf16.msra.mxu1 %v753_v39 }
  0xac   :  { %731 = vmatprep.subr.bf16.mxu0 %v793_v10  ;;  %755 = vmatprep.subr.bf16.mxu1 %v793_v10 }
  0xaf   :  { %733 = vmatpush3.bf16.msra.mxu0 %v732_v44  ;;  %757 = vmatpush3.bf16.msra.mxu1 %v756_v45 }
  0xb0   :  { %734 = vmatprep.subr.bf16.mxu0 %v793_v10  ;;  %758 = vmatprep.subr.bf16.mxu1 %v793_v10 }
  0xb3   :  { %736 = vmatpush3.bf16.msra.mxu0 %v735_v50  ;;  %760 = vmatpush3.bf16.msra.mxu1 %v759_v51 }
 0x169   :  { %v133_v52 = vpop.f32.mrb[0].mxu0  ;;  %v250_v53 = vpop.f32.mrb[0].mxu1 }
 0x16a   :  { %v559_v54 = vpop.f32.mrb[1].mxu0  ;;  %v594_v55 = vpop.f32.mrb[1].mxu1  ;;  %628 = vmatmul.mubr.f32.vlgmr.msra.gmra.mrb[2].mxu0 %v250_v53  ;;  %663 = vmatmul.mubr.f32.vlgmr.msra.gmra.mrb[2].mxu1 %v133_v52 }
 0x23d   :  { %v337_v56 = vpop.f32.mrb[2].mxu0  ;;  %v407_v57 = vpop.f32.mrb[2].mxu1 }
 0x23e   :  { %v408_v59 = vadd.f32 %v407_v57, %v337_v56  ;;  %v629_v60 = vpop.f32.mrb[3].mxu0  ;;  %v664_v61 = vpop.f32.mrb[3].mxu1 }
 0x240   :  { %v418_v10 = vadd.f32 %v456_v58, %v408_v59 }
 0x242   :  { %419 = vst [vmem:[#allocation2] sm:$0x3] %v418_v10 }
 0x243   :  { %779 = shalt.err (!%p776_p4)
}
 0x244   :  { %s780_s14 = scalar_lea.hbm %s1041_s4, 32 }
 0x245   :  { %p781_p5 = scmp.ne.s32.totalorder %s1041_s4, %s780_s14  ;;  %p784_p6 = scmp.lt.u32.totalorder %s780_s14, %s1041_s4 }
 0x247   :  { %p786_p7 = pnand %p784_p6, %p781_p5 }
 0x249   :  { %789 = shalt.err (!%p786_p7)
}
 0x24a   :  { %429 = dma.vmem_to_hbm [thread:$0]  %s427_s10, 32, %s1041_s4, [#allocation3]  }
 0x24b   :  { %790 = dma.done.wait [#allocation3], 32  }
 0x24c   :  { %791 = vsyncadd [#allocation3], 4294967264 }
 0x24d   :  { %433 = vsyncpa [#allocation3], 1 }

</bundles_post_ra>
